<compile_context>
chip_gen: v7x
topology: tpu7x:2x2x1
jax: 0.10.0
libtpu: 0.0.40
codegen_flags: <defaults>
</compile_context>

<pallas_src>
import functools

import jax
import jax.numpy as jnp
from jax import lax
from jax.experimental import pallas as pl
from jax.experimental.pallas import tpu as pltpu

K = 3          # conv kernel size
CIN = 3        # input channels
CMID = 3       # conv1 / bn channels
COUT = 3       # conv2 output channels
BN_EPS = 1e-5


# ----------------------------------------------------------------------------
# Fast path: conv2 input is exactly zero, so output == b2 broadcast.
# b2 arrives as a (COUT, 1) VMEM array; one lane-broadcast, one dense store.
# ----------------------------------------------------------------------------
def _bias_broadcast_kernel(b2_ref, o_ref):
    # o_ref: (COUT, 2N*Ho2*Wo2)   b2_ref: (COUT, 1)
    o_ref[...] = jnp.zeros(o_ref.shape, jnp.float32) + b2_ref[...]


# ----------------------------------------------------------------------------
# Faithful fallback: full compute chain with hoisted taps + scalarized BN.
# (Stores here use the simple proven per-(half, channel) pattern; the default
#  path above already replaces them with a single lane-dense store.)
# ----------------------------------------------------------------------------
def _faithful_kernel(x_ref, w1_ref, b1_ref, g_ref, be_ref, w2_ref, b2_ref, o_ref):
    N, _, H, W = x_ref.shape
    Ho1, Wo1 = H - (K - 1), W - (K - 1)
    Ho2, Wo2 = Ho1 - (K - 1), Wo1 - (K - 1)

    x = x_ref[...].astype(jnp.float32)

    # ---- conv1: 27 unique shifted slices hoisted out of the co loop ----
    acc1 = [jnp.zeros((N, Ho1, Wo1), jnp.float32) + b1_ref[co] for co in range(CMID)]
    for ci in range(CIN):
        for kh in range(K):
            for kw in range(K):
                xs = x[:, ci, kh:kh + Ho1, kw:kw + Wo1]          # emitted once per tap
                for co in range(CMID):
                    wv = w1_ref[co * CIN * K * K + ci * K * K + kh * K + kw]
                    acc1[co] = acc1[co] + wv * xs

    # ---- BatchNorm2d (training-mode batch stats, biased var) + ReLU ----
    cnt = float(N * Ho1 * Wo1)
    r = []
    for c in range(CMID):
        yc = acc1[c]
        mean = jnp.sum(yc) / cnt
        var = jnp.sum(yc * yc) / cnt - mean * mean               # single-pass, biased
        inv = lax.rsqrt(jnp.zeros((1, 1, 1), jnp.float32) + var + BN_EPS)
        scale = inv * g_ref[c]                                   # gamma folded in
        shift = be_ref[c] - mean * scale
        r.append(jnp.maximum(yc * scale + shift, 0.0))

    # ---- cat([r, r+5], dim=0) -> z + neg(z) -> conv2 (hoisted taps) ----
    for h in range(2):
        zz = []
        for c in range(CMID):
            zc = r[c] if h == 0 else r[c] + 5.0
            zz.append(zc + jnp.negative(zc))                     # exact zeros (kept for fidelity)
        acc2 = [jnp.zeros((N, Ho2, Wo2), jnp.float32) + b2_ref[co] for co in range(COUT)]
        for ci in range(CMID):
            for kh in range(K):
                for kw in range(K):
                    zs = zz[ci][:, kh:kh + Ho2, kw:kw + Wo2]     # emitted once per tap
                    for co in range(COUT):
                        wv = w2_ref[co * CMID * K * K + ci * K * K + kh * K + kw]
                        acc2[co] = acc2[co] + wv * zs
        for co in range(COUT):
            o_ref[h * N:(h + 1) * N, co, :, :] = acc2[co]


def model_forward(x, w1, b1, gamma, beta, w2, b2, *, exploit_zero_identity=True):
    """x: (N, 3, H, W) float32, conv weights OIHW.  Returns (2N, 3, H-4, W-4)."""
    N, _, H, W = x.shape
    Ho1, Wo1 = H - (K - 1), W - (K - 1)
    Ho2, Wo2 = Ho1 - (K - 1), Wo1 - (K - 1)
    assert Ho2 > 0 and Wo2 > 0, "spatial size too small for two VALID 3x3 convs"

    vmem = pl.BlockSpec(memory_space=pltpu.MemorySpace.VMEM)
    smem = pl.BlockSpec(memory_space=pltpu.MemorySpace.SMEM)

    if exploit_zero_identity:
        # Entire forward collapses to a b2 broadcast (exact for finite inputs);
        # the activation path is provably dead, so it is not emitted at all.
        m = 2 * N * Ho2 * Wo2
        out = pl.pallas_call(
            _bias_broadcast_kernel,
            out_shape=jax.ShapeDtypeStruct((COUT, m), jnp.float32),
            in_specs=[vmem],
            out_specs=vmem,
        )(b2.reshape(COUT, 1).astype(jnp.float32))
        # Layout plumbing back to NCHW happens outside the kernel (free in XLA).
        return out.reshape(COUT, 2 * N, Ho2, Wo2).transpose(1, 0, 2, 3)

    # Faithful fallback (also preserves NaN/Inf propagation of the chain).
    # TODO(synk): a roll+mask lane-packed input layout (N*H*W -> lane axis) was
    # skipped since the default path never reads x.
    return pl.pallas_call(
        _faithful_kernel,
        out_shape=jax.ShapeDtypeStruct((2 * N, COUT, Ho2, Wo2), jnp.float32),
        in_specs=[vmem, smem, smem, smem, smem, smem, smem],
        out_specs=vmem,
    )(
        x.astype(jnp.float32),
        w1.reshape(-1).astype(jnp.float32),
        b1.astype(jnp.float32),
        gamma.astype(jnp.float32),
        beta.astype(jnp.float32),
        w2.reshape(-1).astype(jnp.float32),
        b2.astype(jnp.float32),
    )


def _reference(x, w1, b1, gamma, beta, w2, b2):
    dn = ("NCHW", "OIHW", "NCHW")
    y = lax.conv_general_dilated(x, w1, (1, 1), "VALID", dimension_numbers=dn)
    y = y + b1[None, :, None, None]
    mean = y.mean(axis=(0, 2, 3), keepdims=True)
    var = y.var(axis=(0, 2, 3), keepdims=True)           # biased
    y = gamma[None, :, None, None] * (y - mean) / jnp.sqrt(var + BN_EPS) \
        + beta[None, :, None, None]
    y = jnp.maximum(y, 0.0)
    z = jnp.concatenate([y, y + 5.0], axis=0)
    z = z + (-z)
    out = lax.conv_general_dilated(z, w2, (1, 1), "VALID", dimension_numbers=dn)
    return out + b2[None, :, None, None]


if __name__ == "__main__":
    key = jax.random.PRNGKey(0)
    k_x, k_w1, k_b1, k_w2, k_b2 = jax.random.split(key, 5)

    N, H, W = 2, 8, 8
    x = jax.random.normal(k_x, (N, CIN, H, W), jnp.float32)

    # Deterministic parameter init (Conv2d-style uniform fan-in bound).
    bound1 = 1.0 / (CIN * K * K) ** 0.5
    w1 = jax.random.uniform(k_w1, (CMID, CIN, K, K), jnp.float32, -bound1, bound1)
    b1 = jax.random.uniform(k_b1, (CMID,), jnp.float32, -bound1, bound1)
    bound2 = 1.0 / (CMID * K * K) ** 0.5
    w2 = jax.random.uniform(k_w2, (COUT, CMID, K, K), jnp.float32, -bound2, bound2)
    b2 = jax.random.uniform(k_b2, (COUT,), jnp.float32, -bound2, bound2)
    gamma = jnp.ones((CMID,), jnp.float32)   # BatchNorm2d defaults
    beta = jnp.zeros((CMID,), jnp.float32)

    ref = _reference(x, w1, b1, gamma, beta, w2, b2)

    # Default (optimized) path: conv2-of-zeros folded to a b2 broadcast.
    fast = jax.jit(functools.partial(model_forward, exploit_zero_identity=True))
    out_fast = jax.block_until_ready(fast(x, w1, b1, gamma, beta, w2, b2))
    assert out_fast.shape == (2 * N, COUT, H - 4, W - 4), out_fast.shape
    assert jnp.allclose(out_fast, ref, atol=1e-4, rtol=1e-4), \
        float(jnp.max(jnp.abs(out_fast - ref)))

    # Faithful fallback path: full conv1/BN/ReLU/cat/conv2 chain.
    faithful = jax.jit(functools.partial(model_forward, exploit_zero_identity=False))
    out_full = jax.block_until_ready(faithful(x, w1, b1, gamma, beta, w2, b2))
    assert out_full.shape == (2 * N, COUT, H - 4, W - 4), out_full.shape
    assert jnp.allclose(out_full, ref, atol=1e-4, rtol=1e-4), \
        float(jnp.max(jnp.abs(out_full - ref)))

    print("KERNEL_OK")
</pallas_src>

<mosaic_0001>
module attributes {stable_mosaic.version = 11 : i64} {
  func.func @_bias_broadcast_kernel(%arg0: memref<3x1xf32, #tpu.memory_space<vmem>>, %arg1: memref<3x64xf32, #tpu.memory_space<vmem>>) attributes {dimension_semantics = [], scalar_prefetch = 0 : i64, scratch_operands = 0 : i64, tpu.core_type = #tpu.core_type<tc>} {
    %cst = arith.constant 0.000000e+00 : f32
    %0 = vector.broadcast %cst : f32 to vector<3x64xf32>
    %c0 = arith.constant 0 : index
    %c0_0 = arith.constant 0 : index
    %1 = vector.load %arg0[%c0, %c0_0] : memref<3x1xf32, #tpu.memory_space<vmem>>, vector<3x1xf32>
    %2 = vector.broadcast %1 : vector<3x1xf32> to vector<3x64xf32>
    %3 = arith.addf %0, %2 : vector<3x64xf32>
    %c0_1 = arith.constant 0 : index
    %c0_2 = arith.constant 0 : index
    %4 = vector.load %arg1[%c0_1, %c0_2] : memref<3x64xf32, #tpu.memory_space<vmem>>, vector<3x64xf32>
    tpu.vector_store %arg1[%c0_1, %c0_2], %3 {strides = array<i32>} : memref<3x64xf32, #tpu.memory_space<vmem>>, vector<3x64xf32>,
    return
  }
}

</mosaic_0001>

<bundles_post_ra>
// kernel: model_forward.1
= control target key start
LH: loop header
LB: loop body
LE: loop exit
PB: predicated region body
PF: predicated region fallthrough
CT: control target
= control target key end

     0   :  { %v23_v0 = vmov 0   ;;  %vm15_vm0 = vcmask 518144   ;;  %s40_s0 = inlined_call_operand.vmem [shape: f32[3,1], index: 0, kind: input, shape index: {}]   ;;  %s41_s1 = inlined_call_operand.vmem [shape: f32[3,64], index: 1, kind: output, shape index: {}]  }
   0x1   :  { %22 = vset.pattern.permute.xlu0 %v23_v0  ;;  %v8_v1 = vld [vmem:[%s40_s0] sm:$0x7] }
   0x2   :  { %11 = vperm.xlu0 %22, %v8_v1  }
  0x81   :  { %v12_v2 = vpop.permute.xlu0 %11 }
  0x82   :  { %16 = vst.msk [vmem:[%s41_s1] sm:$0x7] %vm15_vm0, %v12_v2 }

</bundles_post_ra>
